<compile_context>
chip_gen: v7x
topology: tpu7x:2x2x1
jax: 0.10.0
libtpu: 0.0.40
codegen_flags: <defaults>
</compile_context>

<pallas_src>
import functools

import jax
import jax.numpy as jnp
from jax.experimental import pallas as pl
from jax.experimental.pallas import tpu as pltpu

IN_DIM = 3
H1 = 128
H2 = 128
OUT_DIM = 1


def munet3_kernel(x_ref, w2t_ref, consts_ref, b3_ref, out_ref, *, use_bf16_mxu):
    xt = x_ref[...]                                # (3, tile_b), batch on lanes

    w1c0 = consts_ref[:, 0:1]                      # (128, 1) fc1 weight columns
    w1c1 = consts_ref[:, 1:2]
    w1c2 = consts_ref[:, 2:3]
    b1 = consts_ref[:, 3:4]                        # (128, 1)
    b2 = consts_ref[:, 4:5]                        # (128, 1)
    w3 = consts_ref[:, 5:6]                        # (128, 1)

    # fc1 + relu: K=3 contraction as VPU broadcast FMAs (sublane-broadcast x
    # rows, lane-broadcast weight columns) -- MXU would be 3/256 deep.
    h1 = (w1c0 * xt[0:1, :]
          + w1c1 * xt[1:2, :]
          + w1c2 * xt[2:3, :]
          + b1)
    h1 = jnp.maximum(h1, 0.0)                      # (128, tile_b)

    # fc2 + relu: the only real matmul -> MXU, f32 accumulation.
    if use_bf16_mxu:
        h2 = jnp.dot(w2t_ref[...].astype(jnp.bfloat16), h1.astype(jnp.bfloat16),
                     preferred_element_type=jnp.float32)
    else:
        h2 = jnp.dot(w2t_ref[...], h1, preferred_element_type=jnp.float32)
    h2 = jnp.maximum(h2 + b2, 0.0)                 # (128, tile_b)

    # fc_mu + tanh: elementwise multiply + sublane reduction (15 vreg adds plus
    # one 8-sublane reduce) -> lane-dense (1, tile_b) row; tanh on the EUP.
    mu = jnp.sum(h2 * w3, axis=0, keepdims=True) + b3_ref[0]
    out_ref[...] = jnp.tanh(mu).astype(out_ref.dtype)


def _round_up(n, m):
    return ((n + m - 1) // m) * m


@functools.partial(jax.jit, static_argnames=("tile_b", "use_bf16_mxu"))
def munet3_forward(x, params, *, tile_b=2048, use_bf16_mxu=False):
    """x: (B, 3) float32. params: (w1, b1, w2, b2, w3, b3), W as (in, out), b as (1, out)."""
    w1, b1, w2, b2, w3, b3 = params
    B = x.shape[0]

    # Lane-dense batch tiling: tile must be a multiple of 128 (lane width);
    # clamp for tiny batches so we don't over-pad.
    tile_b = min(tile_b, _round_up(max(B, 1), 128))
    b_pad = _round_up(B, tile_b)
    grid = (b_pad // tile_b,)

    xt = x.T                                         # (3, B): batch on the lane axis
    if b_pad != B:
        xt = jnp.pad(xt, ((0, 0), (0, b_pad - B)))   # zero rows -> finite garbage, sliced off

    # Consolidated VMEM-resident constants: [w1^T | b1^T | b2^T | w3] -> (128, 6).
    consts = jnp.concatenate([w1.T, b1.T, b2.T, w3], axis=1)
    w2t = w2.T                                       # (128, 128): out-features on sublanes
    b3_s = b3.reshape((1,))                          # single scalar, lives in SMEM

    weight_bytes = 4 * (IN_DIM * H1 + H1 + H1 * H2 + H2 + H2 + 1)
    cost = pl.CostEstimate(
        flops=2 * b_pad * (IN_DIM * H1 + H1 * H2 + H2),
        transcendentals=b_pad,
        bytes_accessed=4 * b_pad * (IN_DIM + OUT_DIM) + weight_bytes,
    )

    kernel = functools.partial(munet3_kernel, use_bf16_mxu=use_bf16_mxu)

    out = pl.pallas_call(
        kernel,
        out_shape=jax.ShapeDtypeStruct((OUT_DIM, b_pad), jnp.float32),
        grid=grid,
        in_specs=[
            pl.BlockSpec((IN_DIM, tile_b), lambda i: (0, i)),        # x^T: streamed over batch
            pl.BlockSpec(w2t.shape, lambda i: (0, 0)),               # fc2 weight: VMEM-resident
            pl.BlockSpec(consts.shape, lambda i: (0, 0)),            # fc1/fc_mu consts: resident
            pl.BlockSpec(memory_space=pltpu.MemorySpace.SMEM),       # b3 scalar
        ],
        out_specs=pl.BlockSpec((OUT_DIM, tile_b), lambda i: (0, i)),  # lane-dense output row
        compiler_params=pltpu.CompilerParams(
            dimension_semantics=("parallel",),       # shard batch tiles across v7x's 2 TCs
        ),
        cost_estimate=cost,
    )(xt, w2t, consts, b3_s)

    return out[0, :B].reshape(B, OUT_DIM)


def init_params(key):
    # Mimic PyTorch nn.Linear default init: U(-1/sqrt(fan_in), +1/sqrt(fan_in)).
    def linear(k, fan_in, fan_out):
        kw, kb = jax.random.split(k)
        bound = 1.0 / jnp.sqrt(float(fan_in))
        w = jax.random.uniform(kw, (fan_in, fan_out), jnp.float32, -bound, bound)
        b = jax.random.uniform(kb, (1, fan_out), jnp.float32, -bound, bound)
        return w, b

    k1, k2, k3 = jax.random.split(key, 3)
    w1, b1 = linear(k1, IN_DIM, H1)
    w2, b2 = linear(k2, H1, H2)
    w3, b3 = linear(k3, H2, OUT_DIM)
    return (w1, b1, w2, b2, w3, b3)


def reference(x, params):
    w1, b1, w2, b2, w3, b3 = params
    h = jnp.maximum(x @ w1 + b1, 0.0)
    h = jnp.maximum(h @ w2 + b2, 0.0)
    return jnp.tanh(h @ w3 + b3)


if __name__ == "__main__":
    key = jax.random.PRNGKey(0)
    kx1, kx2, kp = jax.random.split(key, 3)
    params = init_params(kp)

    # Small batch (Pendulum: obs dim = 3, action dim = 1).
    x_small = jax.random.normal(kx1, (8, IN_DIM), dtype=jnp.float32)
    mu_small = munet3_forward(x_small, params)
    jax.block_until_ready(mu_small)
    assert mu_small.shape == (8, OUT_DIM)
    assert jnp.allclose(mu_small, reference(x_small, params), atol=1e-5, rtol=1e-5)

    # Larger, non-multiple-of-tile batch: exercises the batch grid, resident
    # weights across grid steps, the pad/slice path, and the lane-dense output.
    x_big = jax.random.normal(kx2, (300, IN_DIM), dtype=jnp.float32)
    mu_big = munet3_forward(x_big, params, tile_b=128)
    jax.block_until_ready(mu_big)
    assert mu_big.shape == (300, OUT_DIM)
    assert jnp.allclose(mu_big, reference(x_big, params), atol=1e-5, rtol=1e-5)

    print("KERNEL_OK")
</pallas_src>

<mosaic_0001>
module attributes {stable_mosaic.version = 11 : i64} {
  func.func @munet3_kernel(%arg0: i32, %arg1: memref<3x128xf32, #tpu.memory_space<vmem>>, %arg2: memref<128x128xf32, #tpu.memory_space<vmem>>, %arg3: memref<128x6xf32, #tpu.memory_space<vmem>>, %arg4: memref<1xf32, #tpu.memory_space<smem>>, %arg5: memref<1x128xf32, #tpu.memory_space<vmem>>) attributes {dimension_semantics = [#tpu.dimension_semantics<parallel>], iteration_bounds = array<i64: 1>, scalar_prefetch = 0 : i64, scratch_operands = 0 : i64, tpu.core_type = #tpu.core_type<tc>, window_params = [{transform_indices = @transform_0, window_bounds = array<i64: 3, 128>}, {pipeline_mode = #tpu.pipeline_mode<synchronous>, transform_indices = @transform_1, window_bounds = array<i64: 128, 128>}, {pipeline_mode = #tpu.pipeline_mode<synchronous>, transform_indices = @transform_2, window_bounds = array<i64: 128, 6>}, {transform_indices = @transform_3, window_bounds = array<i64: 1>}, {transform_indices = @transform_4, window_bounds = array<i64: 1, 128>}]} {
    %c0 = arith.constant 0 : index
    %c0_0 = arith.constant 0 : index
    %0 = vector.load %arg1[%c0, %c0_0] : memref<3x128xf32, #tpu.memory_space<vmem>>, vector<3x128xf32>
    %c0_1 = arith.constant 0 : index
    %c0_2 = arith.constant 0 : index
    %1 = vector.load %arg3[%c0_1, %c0_2] : memref<128x6xf32, #tpu.memory_space<vmem>>, vector<128x1xf32>
    %c0_3 = arith.constant 0 : index
    %c1 = arith.constant 1 : index
    %2 = vector.load %arg3[%c0_3, %c1] : memref<128x6xf32, #tpu.memory_space<vmem>>, vector<128x1xf32>
    %c0_4 = arith.constant 0 : index
    %c2 = arith.constant 2 : index
    %3 = vector.load %arg3[%c0_4, %c2] : memref<128x6xf32, #tpu.memory_space<vmem>>, vector<128x1xf32>
    %c0_5 = arith.constant 0 : index
    %c3 = arith.constant 3 : index
    %4 = vector.load %arg3[%c0_5, %c3] : memref<128x6xf32, #tpu.memory_space<vmem>>, vector<128x1xf32>
    %c0_6 = arith.constant 0 : index
    %c4 = arith.constant 4 : index
    %5 = vector.load %arg3[%c0_6, %c4] : memref<128x6xf32, #tpu.memory_space<vmem>>, vector<128x1xf32>
    %c0_7 = arith.constant 0 : index
    %c5 = arith.constant 5 : index
    %6 = vector.load %arg3[%c0_7, %c5] : memref<128x6xf32, #tpu.memory_space<vmem>>, vector<128x1xf32>
    %7 = vector.extract_strided_slice %0 {offsets = [0, 0], sizes = [1, 128], strides = [1, 1]} : vector<3x128xf32> to vector<1x128xf32>
    %8 = vector.broadcast %1 : vector<128x1xf32> to vector<128x128xf32>
    %9 = vector.broadcast %7 : vector<1x128xf32> to vector<128x128xf32>
    %10 = arith.mulf %8, %9 : vector<128x128xf32>
    %11 = vector.extract_strided_slice %0 {offsets = [1, 0], sizes = [1, 128], strides = [1, 1]} : vector<3x128xf32> to vector<1x128xf32>
    %12 = vector.broadcast %2 : vector<128x1xf32> to vector<128x128xf32>
    %13 = vector.broadcast %11 : vector<1x128xf32> to vector<128x128xf32>
    %14 = arith.mulf %12, %13 : vector<128x128xf32>
    %15 = arith.addf %10, %14 : vector<128x128xf32>
    %16 = vector.extract_strided_slice %0 {offsets = [2, 0], sizes = [1, 128], strides = [1, 1]} : vector<3x128xf32> to vector<1x128xf32>
    %17 = vector.broadcast %3 : vector<128x1xf32> to vector<128x128xf32>
    %18 = vector.broadcast %16 : vector<1x128xf32> to vector<128x128xf32>
    %19 = arith.mulf %17, %18 : vector<128x128xf32>
    %20 = arith.addf %15, %19 : vector<128x128xf32>
    %21 = vector.broadcast %4 : vector<128x1xf32> to vector<128x128xf32>
    %22 = arith.addf %20, %21 : vector<128x128xf32>
    %cst = arith.constant 0.000000e+00 : f32
    %23 = vector.broadcast %cst : f32 to vector<128x128xf32>
    %24 = arith.maximumf %22, %23 : vector<128x128xf32>
    %c0_8 = arith.constant 0 : index
    %c0_9 = arith.constant 0 : index
    %25 = vector.load %arg2[%c0_8, %c0_9] : memref<128x128xf32, #tpu.memory_space<vmem>>, vector<128x128xf32>
    %cst_10 = arith.constant dense<0.000000e+00> : vector<128x128xf32>
    %26 = tpu.matmul %25, %24, %cst_10 {dimension_numbers = #tpu.dot_dimension_numbers<[1], [0], [0], [1], [0, 0, 1, 1], [], []>} : vector<128x128xf32>, vector<128x128xf32>, vector<128x128xf32> -> vector<128x128xf32>
    %27 = vector.broadcast %5 : vector<128x1xf32> to vector<128x128xf32>
    %28 = arith.addf %26, %27 : vector<128x128xf32>
    %cst_11 = arith.constant 0.000000e+00 : f32
    %29 = vector.broadcast %cst_11 : f32 to vector<128x128xf32>
    %30 = arith.maximumf %28, %29 : vector<128x128xf32>
    %31 = vector.broadcast %6 : vector<128x1xf32> to vector<128x128xf32>
    %32 = arith.mulf %30, %31 : vector<128x128xf32>
    %cst_12 = arith.constant dense<0.000000e+00> : vector<128xf32>
    %33 = vector.multi_reduction <add>, %32, %cst_12 [0] : vector<128x128xf32> to vector<128xf32>
    %34 = vector.shape_cast %33 : vector<128xf32> to vector<1x128xf32>
    %c0_13 = arith.constant 0 : index
    %35 = memref.load %arg4[%c0_13] : memref<1xf32, #tpu.memory_space<smem>>
    %36 = vector.broadcast %35 : f32 to vector<1x128xf32>
    %37 = arith.addf %34, %36 : vector<1x128xf32>
    %38 = math.tanh %37 : vector<1x128xf32>
    %c0_14 = arith.constant 0 : index
    %c0_15 = arith.constant 0 : index
    %39 = vector.load %arg5[%c0_14, %c0_15] : memref<1x128xf32, #tpu.memory_space<vmem>>, vector<1x128xf32>
    tpu.vector_store %arg5[%c0_14, %c0_15], %38 {strides = array<i32>} : memref<1x128xf32, #tpu.memory_space<vmem>>, vector<1x128xf32>,
    return
  }
  func.func @transform_0(%arg0: i32) -> (i32, i32) {
    %c0_i32 = arith.constant 0 : i32
    %c0_i32_0 = arith.constant 0 : i32
    return %c0_i32, %arg0 : i32, i32
  }
  func.func @transform_1(%arg0: i32) -> (i32, i32) {
    %c0_i32 = arith.constant 0 : i32
    %c0_i32_0 = arith.constant 0 : i32
    %c0_i32_1 = arith.constant 0 : i32
    return %c0_i32, %c0_i32_0 : i32, i32
  }
  func.func @transform_2(%arg0: i32) -> (i32, i32) {
    %c0_i32 = arith.constant 0 : i32
    %c0_i32_0 = arith.constant 0 : i32
    %c0_i32_1 = arith.constant 0 : i32
    return %c0_i32, %c0_i32_0 : i32, i32
  }
  func.func @transform_3(%arg0: i32) -> i32 {
    %c0_i32 = arith.constant 0 : i32
    %c0_i32_0 = arith.constant 0 : i32
    return %c0_i32 : i32
  }
  func.func @transform_4(%arg0: i32) -> (i32, i32) {
    %c0_i32 = arith.constant 0 : i32
    %c0_i32_0 = arith.constant 0 : i32
    return %c0_i32, %arg0 : i32, i32
  }
}

</mosaic_0001>

<bundles_post_ra>
// kernel: munet3_forward.1
= control target key start
LH: loop header
LB: loop body
LE: loop exit
PB: predicated region body
PF: predicated region fallthrough
CT: control target
= control target key end

     0   :  { %v976_v0 = vmov 3   ;;  %v977_v1 = vmov 1   ;;  %v978_v6 = vmov 2   ;;  %v979_v8 = vmov 0   ;;  %s1401_s2 = inlined_call_operand.vmem [shape: f32[128,6], index: 2, kind: input, shape index: {}]   ;;  %s1402_s0 = inlined_call_operand.vmem [shape: f32[3,128], index: 0, kind: input, shape index: {}]   ;;  %s1403_s1 = inlined_call_operand.vmem [shape: f32[128,128], index: 1, kind: input, shape index: {}]   ;;  %s1404_s3 = inlined_call_operand.<no memory space> [shape: f32[1], index: 3, kind: input, shape index: {}]   ;;  %s1405_s4 = inlined_call_operand.vmem [shape: f32[1,128], index: 4, kind: output, shape index: {}]  }
   0x1   :  { %930 = vset.pattern.permute.xlu0 %v976_v0  ;;  %924 = vset.pattern.permute.xlu1 %v977_v1  ;;  %v1012_v2 = vld [vmem:[%s1401_s2 + $0x8] sm:$0xff]  ;;  %v1017_v3 = vld [vmem:[%s1401_s2] sm:$0xff]  ;;  %v1031_v5 = vld [vmem:[%s1401_s2 + $0x38] sm:$0xff]  ;;  %v115_v37 = vlaneseq }
   0x2   :  { %340 = vperm.xlu0 %930, %v1012_v2   ;;  %136 = vperm.xlu1 %924, %v1017_v3   ;;  %v1024_v4 = vld [vmem:[%s1401_s2 + $0x20] sm:$0xff]  ;;  %v1039_v7 = vld [vmem:[%s1401_s2 + $0x10] sm:$0xff]  ;;  %v1056_v10 = vld [vmem:[%s1401_s2 + $0x18] sm:$0xff] }
   0x3   :  { %v1050_v9 = vld [vmem:[%s1401_s2 + $0x50] sm:$0xff]  ;;  %v1062_v11 = vld [vmem:[%s1401_s2 + $0x68] sm:$0xff]  ;;  %v1099_v15 = vld [vmem:[%s1401_s2 + $0x60] sm:$0xff]  ;;  %v116_v40 = vshrl.u32 %v115_v37, 7 }
   0x4   :  { %v1079_v12 = vld [vmem:[%s1401_s2 + $0x30] sm:$0xff]  ;;  %v1084_v13 = vld [vmem:[%s1401_s2 + $0x28] sm:$0xff]  ;;  %v1106_v16 = vld [vmem:[%s1401_s2 + $0x78] sm:$0xff] }
   0x5   :  { %v1091_v14 = vld [vmem:[%s1401_s2 + $0x48] sm:$0xff]  ;;  %v1123_v17 = vld [vmem:[%s1401_s2 + $0x40] sm:$0xff]  ;;  %v1130_v18 = vld [vmem:[%s1401_s2 + $0x58] sm:$0xff]  ;;  %v201_v43 = vsub.s32 1, %v116_v40  ;;  %v117_v44 = vsub.s32 0, %v116_v40  ;;  %v301_v48 = vsub.s32 2, %v116_v40 }
   0x6   :  { %352 = vperm.xlu0 %930, %v1024_v4   ;;  %140 = vperm.xlu1 %924, %v1012_v2   ;;  %v1138_v19 = vld [vmem:[%s1401_s2 + $0x70] sm:$0xff]  ;;  %v18_v45 = vld [vmem:[%s1402_s0] sm:$0x7] }
   0x7   :  { %v1204_v47 = vrot.slane %v18_v45, %v201_v43  ;;  %v1206_v49 = vrot.slane %v18_v45, %v117_v44  ;;  %v1216_v55 = vrot.slane %v18_v45, %v301_v48 }
   0xa   :  { %364 = vperm.xlu0 %930, %v1031_v5   ;;  %925 = vset.pattern.permute.xlu1 %v978_v6 }
   0xb   :  { %240 = vperm.xlu1 %925, %v1012_v2  }
   0xe   :  { %943 = vset.pattern.permute.xlu0 %v977_v1 }
   0xf   :  { %152 = vperm.xlu0 %943, %v1024_v4   ;;  %926 = vset.pattern.permute.xlu1 %v979_v8 }
  0x10   :  { %47 = vperm.xlu1 %926, %v1039_v7  }
  0x13   :  { %164 = vperm.xlu0 %943, %v1031_v5  }
  0x14   :  { %927 = vset.pattern.permute.xlu1 %v977_v1 }
  0x15   :  { %144 = vperm.xlu1 %927, %v1039_v7  }
  0x17   :  { %176 = vperm.xlu0 %943, %v1050_v9  }
  0x19   :  { %148 = vperm.xlu1 %927, %v1056_v10  }
  0x1b   :  { %188 = vperm.xlu0 %943, %v1062_v11  }
  0x1d   :  { %928 = vset.pattern.permute.xlu1 %v978_v6 }
  0x1e   :  { %248 = vperm.xlu1 %928, %v1056_v10  }
  0x1f   :  { %950 = vset.pattern.permute.xlu0 %v979_v8 }
  0x20   :  { %37 = vperm.xlu0 %950, %v1017_v3  }
  0x22   :  { %929 = vset.pattern.permute.xlu1 %v976_v0 }
  0x23   :  { %336 = vperm.xlu1 %929, %v1017_v3  }
  0x24   :  { %42 = vperm.xlu0 %950, %v1012_v2  }
  0x27   :  { %931 = vset.pattern.permute.xlu1 %v979_v8 }
  0x28   :  { %52 = vperm.xlu0 %950, %v1056_v10   ;;  %57 = vperm.xlu1 %931, %v1024_v4  }
  0x2c   :  { %67 = vperm.xlu0 %950, %v1079_v12   ;;  %62 = vperm.xlu1 %931, %v1084_v13  }
  0x30   :  { %82 = vperm.xlu0 %950, %v1091_v14   ;;  %932 = vset.pattern.permute.xlu1 %v977_v1 }
  0x31   :  { %156 = vperm.xlu1 %932, %v1084_v13  }
  0x34   :  { %97 = vperm.xlu0 %950, %v1099_v15  }
  0x35   :  { %933 = vset.pattern.permute.xlu1 %v978_v6 }
  0x36   :  { %252 = vperm.xlu1 %933, %v1024_v4  }
  0x38   :  { %112 = vperm.xlu0 %950, %v1106_v16  }
  0x3a   :  { %934 = vset.pattern.permute.xlu1 %v976_v0 }
  0x3b   :  { %344 = vperm.xlu1 %934, %v1039_v7  }
  0x3c   :  { %954 = vset.pattern.permute.xlu0 %v978_v6 }
  0x3d   :  { %236 = vperm.xlu0 %954, %v1017_v3  }
  0x3f   :  { %348 = vperm.xlu1 %934, %v1056_v10  }
  0x41   :  { %244 = vperm.xlu0 %954, %v1039_v7  }
  0x43   :  { %935 = vset.pattern.permute.xlu1 %v979_v8 }
  0x44   :  { %72 = vperm.xlu1 %935, %v1031_v5  }
  0x45   :  { %256 = vperm.xlu0 %954, %v1084_v13  }
  0x48   :  { %936 = vset.pattern.permute.xlu1 %v977_v1 }
  0x49   :  { %160 = vperm.xlu1 %936, %v1079_v12   ;;  %268 = vperm.xlu0 %954, %v1123_v17  }
  0x4d   :  { %937 = vset.pattern.permute.xlu1 %v978_v6  ;;  %280 = vperm.xlu0 %954, %v1130_v18  }
  0x4e   :  { %260 = vperm.xlu1 %937, %v1079_v12  }
  0x51   :  { %292 = vperm.xlu0 %954, %v1138_v19  }
  0x52   :  { %264 = vperm.xlu1 %937, %v1031_v5  }
  0x55   :  { %956 = vset.pattern.permute.xlu0 %v976_v0 }
  0x56   :  { %938 = vset.pattern.permute.xlu1 %v976_v0  ;;  %376 = vperm.xlu0 %956, %v1050_v9  }
  0x57   :  { %356 = vperm.xlu1 %938, %v1084_v13  }
  0x5a   :  { %388 = vperm.xlu0 %956, %v1062_v11  }
  0x5b   :  { %939 = vset.pattern.permute.xlu1 %v979_v8 }
  0x5c   :  { %77 = vperm.xlu1 %939, %v1123_v17  }
  0x60   :  { %940 = vset.pattern.permute.xlu1 %v977_v1 }
  0x61   :  { %168 = vperm.xlu1 %940, %v1123_v17  }
  0x65   :  { %172 = vperm.xlu1 %940, %v1091_v14  }
  0x69   :  { %941 = vset.pattern.permute.xlu1 %v978_v6 }
  0x6a   :  { %272 = vperm.xlu1 %941, %v1091_v14  }
  0x6e   :  { %942 = vset.pattern.permute.xlu1 %v976_v0 }
  0x6f   :  { %360 = vperm.xlu1 %942, %v1079_v12  }
  0x73   :  { %944 = vset.pattern.permute.xlu1 %v979_v8 }
  0x74   :  { %87 = vperm.xlu1 %944, %v1050_v9  }
  0x78   :  { %92 = vperm.xlu1 %944, %v1130_v18  }
  0x7c   :  { %945 = vset.pattern.permute.xlu1 %v977_v1 }
  0x7d   :  { %180 = vperm.xlu1 %945, %v1130_v18  }
  0x81   :  { %946 = vset.pattern.permute.xlu1 %v978_v6  ;;  %v1162_v20 = vpop.permute.xlu1 %136  ;;  %v1164_v21 = vpop.permute.xlu0 %340 }
  0x82   :  { %276 = vperm.xlu1 %946, %v1050_v9  }
  0x85   :  { %v141_v22 = vpop.permute.xlu1 %140  ;;  %v1167_v23 = vpop.permute.xlu0 %352 }
  0x86   :  { %947 = vset.pattern.permute.xlu1 %v976_v0  ;;  %v204_v56 = vmul.f32 %v1204_v47, %v141_v22 }
  0x87   :  { %368 = vperm.xlu1 %947, %v1123_v17  }
  0x89   :  { %v1171_v24 = vpop.permute.xlu0 %364 }
  0x8a   :  { %v241_v25 = vpop.permute.xlu1 %240 }
  0x8b   :  { %372 = vperm.xlu1 %947, %v1091_v14   ;;  %v304_v63 = vmul.f32 %v1216_v55, %v241_v25 }
  0x8e   :  { %v153_v26 = vpop.permute.xlu0 %152 }
  0x8f   :  { %948 = vset.pattern.permute.xlu1 %v979_v8  ;;  %v1175_v27 = vpop.permute.xlu1 %47  ;;  %v207_v51 = vmul.f32 %v1204_v47, %v153_v26  ;;  %v203_v26 = vmul.f32 %v1204_v47, %v1162_v20 }
  0x90   :  { %102 = vperm.xlu1 %948, %v1062_v11  }
  0x92   :  { %v1178_v28 = vpop.permute.xlu0 %164 }
  0x94   :  { %949 = vset.pattern.permute.xlu1 %v977_v1  ;;  %v145_v29 = vpop.permute.xlu1 %144 }
  0x95   :  { %184 = vperm.xlu1 %949, %v1099_v15   ;;  %v205_v25 = vmul.f32 %v1204_v47, %v145_v29 }
  0x96   :  { %v1182_v30 = vpop.permute.xlu0 %176 }
  0x98   :  { %v149_v31 = vpop.permute.xlu1 %148 }
  0x99   :  { %951 = vset.pattern.permute.xlu1 %v978_v6 }
  0x9a   :  { %284 = vperm.xlu1 %951, %v1099_v15   ;;  %v1186_v32 = vpop.permute.xlu0 %188 }
  0x9d   :  { %v249_v33 = vpop.permute.xlu1 %248 }
  0x9e   :  { %288 = vperm.xlu1 %951, %v1062_v11   ;;  %v306_v43 = vmul.f32 %v1216_v55, %v249_v33 }
  0x9f   :  { %v38_v34 = vpop.permute.xlu0 %37 }
  0xa2   :  { %952 = vset.pattern.permute.xlu1 %v976_v0  ;;  %v337_v35 = vpop.permute.xlu1 %336 }
  0xa3   :  { %v43_v36 = vpop.permute.xlu0 %42  ;;  %380 = vperm.xlu1 %952, %v1130_v18  }
  0xa4   :  { %v120_v53 = vmul.f32 %v1206_v49, %v43_v36  ;;  %v206_v36 = vmul.f32 %v1204_v47, %v149_v31 }
  0xa6   :  { %v220_v60 = vadd.f32 %v204_v56, %v120_v53 }
  0xa7   :  { %v53_v38 = vpop.permute.xlu0 %52  ;;  %953 = vset.pattern.permute.xlu1 %v979_v8  ;;  %v58_v39 = vpop.permute.xlu1 %57 }
  0xa8   :  { %107 = vperm.xlu1 %953, %v1138_v19   ;;  %v123_v52 = vmul.f32 %v1206_v49, %v58_v39  ;;  %v122_v8 = vmul.f32 %v1206_v49, %v53_v38  ;;  %v320_v37 = vadd.f32 %v304_v63, %v220_v60  ;;  %v439_v63 = vld [vmem:[%s1403_s1 + $0x40] sm:$0xff] }
  0xa9   :  { %858 = vmatprep.mubr.f32.mxu1 %v439_v63 }
  0xaa   :  { %v223_v58 = vadd.f32 %v207_v51, %v123_v52  ;;  %v222_v40 = vadd.f32 %v206_v36, %v122_v8  ;;  %v400_v20 = vadd.f32 %v1164_v21, %v320_v37 }
  0xab   :  { %v1193_v41 = vpop.permute.xlu1 %62  ;;  %v1195_v42 = vpop.permute.xlu0 %67 }
  0xac   :  { %955 = vset.pattern.permute.xlu1 %v977_v1  ;;  %v119_v1 = vmul.f32 %v1206_v49, %v38_v34  ;;  %v322_v51 = vadd.f32 %v306_v43, %v222_v40  ;;  %v416_v52 = vmax.f32 %v400_v20, 0.0  ;;  %v981_v43 = vmov 5  }
  0xad   :  { %192 = vperm.xlu1 %955, %v1138_v19   ;;  %961 = vset.pattern.permute.xlu0 %v981_v43 }
  0xae   :  { %v219_v34 = vadd.f32 %v203_v26, %v119_v1  ;;  %v124_v26 = vmul.f32 %v1206_v49, %v1193_v41  ;;  %677 = vperm.xlu0 %961, %v1012_v2  }
  0xaf   :  { %v1202_v46 = vpop.permute.xlu0 %82 }
  0xb0   :  { %v1208_v50 = vpop.permute.xlu1 %156 }
  0xb1   :  { %196 = vperm.xlu1 %955, %v1106_v16  }
  0xb2   :  { %689 = vperm.xlu0 %961, %v1024_v4  }
  0xb3   :  { %v1214_v54 = vpop.permute.xlu0 %97 }
  0xb5   :  { %957 = vset.pattern.permute.xlu1 %v978_v6  ;;  %v253_v57 = vpop.permute.xlu1 %252 }
  0xb6   :  { %v307_v59 = vmul.f32 %v1216_v55, %v253_v57  ;;  %296 = vperm.xlu1 %957, %v1106_v16   ;;  %701 = vperm.xlu0 %961, %v1031_v5  }
  0xb7   :  { %v1222_v61 = vpop.permute.xlu0 %112 }
  0xb8   :  { %v323_v62 = vadd.f32 %v307_v59, %v223_v58 }
  0xba   :  { %958 = vset.pattern.permute.xlu1 %v976_v0  ;;  %v345_v22 = vpop.permute.xlu1 %344  ;;  %v1229_v6 = vadd.f32 %v1167_v23, %v323_v62  ;;  %v121_v23 = vmul.f32 %v1206_v49, %v1175_v27  ;;  %v431_v62 = vld [vmem:[%s1403_s1] sm:$0xff]  ;;  %713 = vperm.xlu0 %961, %v1050_v9  }
  0xbb   :  { %384 = vperm.xlu1 %958, %v1099_v15   ;;  %846 = vmatprep.mubr.f32.mxu0 %v431_v62 }
  0xbc   :  { %v237_v39 = vpop.permute.xlu0 %236  ;;  %v221_v45 = vadd.f32 %v205_v25, %v121_v23  ;;  %v980_v23 = vmov 4  }
  0xbd   :  { %v303_v38 = vmul.f32 %v1216_v55, %v237_v39 }
  0xbe   :  { %v349_v0 = vpop.permute.xlu1 %348  ;;  %969 = vset.pattern.permute.xlu0 %v980_v23 }
  0xbf   :  { %v319_v44 = vadd.f32 %v303_v38, %v219_v34  ;;  %392 = vperm.xlu1 %958, %v1138_v19   ;;  %v402_v56 = vadd.f32 %v349_v0, %v322_v51  ;;  %v419_v38 = vmax.f32 %v1229_v6, 0.0  ;;  %v210_v6 = vmul.f32 %v1204_v47, %v1178_v28  ;;  %448 = vperm.xlu0 %969, %v1017_v3  }
  0xc0   :  { %v245_v31 = vpop.permute.xlu0 %244 }
  0xc1   :  { %v399_v48 = vadd.f32 %v337_v35, %v319_v44  ;;  %v305_v29 = vmul.f32 %v1216_v55, %v245_v31  ;;  %v418_v59 = vmax.f32 %v402_v56, 0.0 }
  0xc3   :  { %v415_v53 = vmax.f32 %v399_v48, 0.0  ;;  %v321_v57 = vadd.f32 %v305_v29, %v221_v45  ;;  %396 = vperm.xlu1 %958, %v1106_v16   ;;  %v73_v27 = vpop.permute.xlu1 %72  ;;  %v125_v45 = vmul.f32 %v1206_v49, %v1195_v42  ;;  %460 = vperm.xlu0 %969, %v1056_v10  }
  0xc4   :  { %v257_v8 = vpop.permute.xlu0 %256  ;;  %v126_v44 = vmul.f32 %v1206_v49, %v73_v27 }
  0xc5   :  { %v870_v58 = vpack.c.bf16 %v416_v52, %v415_v53  ;;  %v401_v33 = vadd.f32 %v345_v22, %v321_v57  ;;  %v208_v22 = vmul.f32 %v1204_v47, %v1208_v50  ;;  %v308_v36 = vmul.f32 %v1216_v55, %v257_v8 }
  0xc6   :  { %v226_v48 = vadd.f32 %v210_v6, %v126_v44 }
  0xc7   :  { %v417_v21 = vmax.f32 %v401_v33, 0.0  ;;  %871 = vmatprep.subr.bf16.mxu0 %v870_v58  ;;  %902 = vmatprep.subr.bf16.mxu1 %v870_v58  ;;  %v224_v39 = vadd.f32 %v208_v22, %v124_v26 }
  0xc8   :  { %v161_v60 = vpop.permute.xlu1 %160  ;;  %873 = vmatpush3.bf16.msra.mxu0 %v870_v58  ;;  %910 = vmatpush3.bf16.msra.mxu1 %v870_v58 }
  0xc9   :  { %v874_v35 = vpack.c.bf16 %v418_v59, %v417_v21  ;;  %v324_v25 = vadd.f32 %v308_v36, %v224_v39  ;;  %959 = vset.pattern.permute.xlu1 %v980_v23  ;;  %v209_v51 = vmul.f32 %v1204_v47, %v161_v60  ;;  %468 = vperm.xlu0 %969, %v1084_v13  }
  0xca   :  { %452 = vperm.xlu1 %959, %v1012_v2  }
  0xcb   :  { %875 = vmatprep.subr.bf16.mxu0 %v874_v35  ;;  %903 = vmatprep.subr.bf16.mxu1 %v874_v35  ;;  %v225_v53 = vadd.f32 %v209_v51, %v125_v45 }
  0xcc   :  { %877 = vmatpush3.bf16.msra.mxu0 %v874_v35  ;;  %911 = vmatpush3.bf16.msra.mxu1 %v874_v35  ;;  %v128_v35 = vmul.f32 %v1206_v49, %v1202_v46 }
  0xcd   :  { %v261_v1 = vpop.permute.xlu1 %260  ;;  %480 = vperm.xlu0 %969, %v1123_v17  }
  0xce   :  { %456 = vperm.xlu1 %959, %v1039_v7   ;;  %v309_v28 = vmul.f32 %v1216_v55, %v261_v1 }
  0xd0   :  { %v325_v56 = vadd.f32 %v309_v28, %v225_v53 }
  0xd1   :  { %v265_v37 = vpop.permute.xlu1 %264  ;;  %492 = vperm.xlu0 %969, %v1130_v18  }
  0xd2   :  { %960 = vset.pattern.permute.xlu1 %v981_v43  ;;  %v310_v2 = vmul.f32 %v1216_v55, %v265_v37 }
  0xd3   :  { %673 = vperm.xlu1 %960, %v1017_v3  }
  0xd4   :  { %v326_v29 = vadd.f32 %v310_v2, %v226_v48 }
  0xd5   :  { %504 = vperm.xlu0 %969, %v1138_v19  }
  0xd6   :  { %v357_v34 = vpop.permute.xlu1 %356  ;;  %v406_v42 = vadd.f32 %v1171_v24, %v326_v29  ;;  %v269_v24 = vpop.permute.xlu0 %268 }
  0xd7   :  { %v404_v40 = vadd.f32 %v357_v34, %v324_v25  ;;  %962 = vset.pattern.permute.xlu1 %v980_v23 }
  0xd8   :  { %464 = vperm.xlu1 %962, %v1024_v4   ;;  %v422_v33 = vmax.f32 %v406_v42, 0.0 }
  0xd9   :  { %v420_v0 = vmax.f32 %v404_v40, 0.0  ;;  %972 = vset.pattern.permute.xlu0 %v981_v43 }
  0xda   :  { %725 = vperm.xlu0 %972, %v1062_v11  }
  0xdb   :  { %v878_v50 = vpack.c.bf16 %v420_v0, %v419_v38  ;;  %v78_v20 = vpop.permute.xlu1 %77  ;;  %v213_v0 = vmul.f32 %v1204_v47, %v1182_v30 }
  0xdc   :  { %963 = vset.pattern.permute.xlu1 %v981_v43  ;;  %v127_v21 = vmul.f32 %v1206_v49, %v78_v20 }
  0xdd   :  { %879 = vmatprep.subr.bf16.mxu0 %v878_v50  ;;  %904 = vmatprep.subr.bf16.mxu1 %v878_v50 }
  0xde   :  { %881 = vmatpush3.bf16.msra.mxu0 %v878_v50  ;;  %912 = vmatpush3.bf16.msra.mxu1 %v878_v50 }
  0xdf   :  { %681 = vperm.xlu1 %963, %v1039_v7  }
  0xe0   :  { %v169_v41 = vpop.permute.xlu1 %168 }
  0xe3   :  { %685 = vperm.xlu1 %963, %v1056_v10   ;;  %v211_v10 = vmul.f32 %v1204_v47, %v169_v41 }
  0xe4   :  { %v173_v31 = vpop.permute.xlu1 %172 }
  0xe5   :  { %v227_v62 = vadd.f32 %v211_v10, %v127_v21  ;;  %v212_v63 = vmul.f32 %v1204_v47, %v173_v31 }
  0xe7   :  { %964 = vset.pattern.permute.xlu1 %v980_v23  ;;  %v228_v22 = vadd.f32 %v212_v63, %v128_v35 }
  0xe8   :  { %472 = vperm.xlu1 %964, %v1079_v12  }
  0xe9   :  { %v273_v52 = vpop.permute.xlu1 %272 }
  0xea   :  { %v312_v1 = vmul.f32 %v1216_v55, %v273_v52 }
  0xec   :  { %476 = vperm.xlu1 %964, %v1031_v5   ;;  %v311_v5 = vmul.f32 %v1216_v55, %v269_v24  ;;  %v328_v36 = vadd.f32 %v312_v1, %v228_v22 }
  0xee   :  { %v361_v57 = vpop.permute.xlu1 %360  ;;  %v327_v26 = vadd.f32 %v311_v5, %v227_v62  ;;  %v134_v5 = vmul.f32 %v1206_v49, %v1222_v61 }
  0xef   :  { %v405_v27 = vadd.f32 %v361_v57, %v325_v56 }
  0xf0   :  { %965 = vset.pattern.permute.xlu1 %v981_v43 }
  0xf1   :  { %v421_v58 = vmax.f32 %v405_v27, 0.0  ;;  %693 = vperm.xlu1 %965, %v1084_v13  }
  0xf3   :  { %v882_v4 = vpack.c.bf16 %v422_v33, %v421_v58  ;;  %v88_v59 = vpop.permute.xlu1 %87  ;;  %v216_v58 = vmul.f32 %v1204_v47, %v1186_v32 }
  0xf4   :  { %v129_v50 = vmul.f32 %v1206_v49, %v88_v59 }
  0xf5   :  { %883 = vmatprep.subr.bf16.mxu0 %v882_v4  ;;  %905 = vmatprep.subr.bf16.mxu1 %v882_v4 }
  0xf6   :  { %885 = vmatpush3.bf16.msra.mxu0 %v882_v4  ;;  %913 = vmatpush3.bf16.msra.mxu1 %v882_v4  ;;  %v229_v44 = vadd.f32 %v213_v0, %v129_v50  ;;  %v435_v0 = vld [vmem:[%s1403_s1 + $0x20] sm:$0xff] }
  0xf7   :  { %v93_v3 = vpop.permute.xlu1 %92  ;;  %697 = vperm.xlu1 %965, %v1079_v12   ;;  %v281_v12 = vpop.permute.xlu0 %280  ;;  %v443_v50 = vld [vmem:[%s1403_s1 + $0x60] sm:$0xff] }
  0xf8   :  { %v130_v31 = vmul.f32 %v1206_v49, %v93_v3 }
  0xfb   :  { %966 = vset.pattern.permute.xlu1 %v980_v23  ;;  %v293_v20 = vpop.permute.xlu0 %292 }
  0xfc   :  { %v181_v7 = vpop.permute.xlu1 %180  ;;  %484 = vperm.xlu1 %966, %v1091_v14  }
  0xff   :  { %v377_v48 = vpop.permute.xlu0 %376 }
 0x100   :  { %488 = vperm.xlu1 %966, %v1050_v9   ;;  %v214_v9 = vmul.f32 %v1204_v47, %v181_v7 }
 0x101   :  { %v277_v60 = vpop.permute.xlu1 %276 }
 0x102   :  { %v313_v41 = vmul.f32 %v1216_v55, %v277_v60  ;;  %v230_v2 = vadd.f32 %v214_v9, %v130_v31  ;;  %v444_v9 = vld [vmem:[%s1403_s1 + $0x68] sm:$0xff]  ;;  %v446_v31 = vld [vmem:[%s1403_s1 + $0x78] sm:$0xff] }
 0x103   :  { %v389_v7 = vpop.permute.xlu0 %388 }
 0x104   :  { %967 = vset.pattern.permute.xlu1 %v981_v43  ;;  %v329_v45 = vadd.f32 %v313_v41, %v229_v44  ;;  %v437_v41 = vld [vmem:[%s1403_s1 + $0x30] sm:$0xff]  ;;  %v438_v44 = vld [vmem:[%s1403_s1 + $0x38] sm:$0xff] }
 0x105   :  { %705 = vperm.xlu1 %967, %v1123_v17   ;;  %v314_v17 = vmul.f32 %v1216_v55, %v281_v12  ;;  %v434_v12 = vld [vmem:[%s1403_s1 + $0x18] sm:$0xff] }
 0x106   :  { %v369_v8 = vpop.permute.xlu1 %368  ;;  %v409_v51 = vadd.f32 %v377_v48, %v329_v45 }
 0x107   :  { %v407_v13 = vadd.f32 %v369_v8, %v327_v26 }
 0x108   :  { %v425_v52 = vmax.f32 %v409_v51, 0.0 }
 0x109   :  { %v423_v39 = vmax.f32 %v407_v13, 0.0  ;;  %709 = vperm.xlu1 %967, %v1091_v14   ;;  %v330_v14 = vadd.f32 %v314_v17, %v230_v2 }
 0x10a   :  { %v373_v46 = vpop.permute.xlu1 %372 }
 0x10b   :  { %v408_v37 = vadd.f32 %v373_v46, %v328_v36 }
 0x10d   :  { %v424_v25 = vmax.f32 %v408_v37, 0.0  ;;  %968 = vset.pattern.permute.xlu1 %v980_v23 }
 0x10e   :  { %496 = vperm.xlu1 %968, %v1099_v15  }
 0x10f   :  { %v886_v34 = vpack.c.bf16 %v424_v25, %v423_v39  ;;  %v103_v40 = vpop.permute.xlu1 %102  ;;  %v440_v25 = vld [vmem:[%s1403_s1 + $0x48] sm:$0xff] }
 0x110   :  { %v132_v27 = vmul.f32 %v1206_v49, %v103_v40  ;;  %v441_v40 = vld [vmem:[%s1403_s1 + $0x50] sm:$0xff] }
 0x111   :  { %887 = vmatprep.subr.bf16.mxu0 %v886_v34  ;;  %906 = vmatprep.subr.bf16.mxu1 %v886_v34 }
 0x112   :  { %889 = vmatpush3.bf16.msra.mxu0 %v886_v34  ;;  %914 = vmatpush3.bf16.msra.mxu1 %v886_v34  ;;  %v232_v33 = vadd.f32 %v216_v58, %v132_v27  ;;  %v433_v34 = vld [vmem:[%s1403_s1 + $0x10] sm:$0xff] }
 0x113   :  { %500 = vperm.xlu1 %968, %v1062_v11  }
 0x114   :  { %v185_v38 = vpop.permute.xlu1 %184 }
 0x115   :  { %v215_v4 = vmul.f32 %v1204_v47, %v185_v38  ;;  %v442_v38 = vld [vmem:[%s1403_s1 + $0x58] sm:$0xff] }
 0x117   :  { %970 = vset.pattern.permute.xlu1 %v981_v43 }
 0x118   :  { %717 = vperm.xlu1 %970, %v1130_v18  }
 0x119   :  { %v285_v6 = vpop.permute.xlu1 %284 }
 0x11a   :  { %v315_v59 = vmul.f32 %v1216_v55, %v285_v6  ;;  %v445_v6 = vld [vmem:[%s1403_s1 + $0x70] sm:$0xff] }
 0x11c   :  { %721 = vperm.xlu1 %970, %v1099_v15   ;;  %v131_v15 = vmul.f32 %v1206_v49, %v1214_v54 }
 0x11d   :  { %v289_v30 = vpop.permute.xlu1 %288 }
 0x11e   :  { %v316_v18 = vmul.f32 %v1216_v55, %v289_v30  ;;  %v231_v10 = vadd.f32 %v215_v4, %v131_v15 }
 0x120   :  { %971 = vset.pattern.permute.xlu1 %v980_v23  ;;  %v332_v3 = vadd.f32 %v316_v18, %v232_v33  ;;  %v331_v60 = vadd.f32 %v315_v59, %v231_v10 }
 0x121   :  { %508 = vperm.xlu1 %971, %v1106_v16  }
 0x122   :  { %v381_v28 = vpop.permute.xlu1 %380  ;;  %v412_v24 = vadd.f32 %v389_v7, %v332_v3 }
 0x123   :  { %v410_v29 = vadd.f32 %v381_v28, %v330_v14 }
 0x124   :  { %v428_v63 = vmax.f32 %v412_v24, 0.0 }
 0x125   :  { %v426_v53 = vmax.f32 %v410_v29, 0.0  ;;  %973 = vset.pattern.permute.xlu1 %v981_v43 }
 0x126   :  { %729 = vperm.xlu1 %973, %v1138_v19   ;;  %v317_v19 = vmul.f32 %v1216_v55, %v293_v20  ;;  %v436_v20 = vld [vmem:[%s1403_s1 + $0x28] sm:$0xff] }
 0x127   :  { %v890_v42 = vpack.c.bf16 %v426_v53, %v425_v52  ;;  %v108_v56 = vpop.permute.xlu1 %107 }
 0x128   :  { %v133_v21 = vmul.f32 %v1206_v49, %v108_v56 }
 0x129   :  { %891 = vmatprep.subr.bf16.mxu0 %v890_v42  ;;  %907 = vmatprep.subr.bf16.mxu1 %v890_v42 }
 0x12a   :  { %893 = vmatpush3.bf16.msra.mxu0 %v890_v42  ;;  %915 = vmatpush3.bf16.msra.mxu1 %v890_v42 }
 0x12b   :  { %733 = vperm.xlu1 %973, %v1106_v16  }
 0x12c   :  { %v193_v57 = vpop.permute.xlu1 %192 }
 0x12d   :  { %v217_v32 = vmul.f32 %v1204_v47, %v193_v57  ;;  %v678_v52 = vpop.permute.xlu0 %677 }
 0x12f   :  { %v233_v35 = vadd.f32 %v217_v32, %v133_v21 }
 0x130   :  { %v197_v11 = vpop.permute.xlu1 %196 }
 0x131   :  { %v218_v54 = vmul.f32 %v1204_v47, %v197_v11  ;;  %v333_v36 = vadd.f32 %v317_v19, %v233_v35  ;;  %v690_v42 = vpop.permute.xlu0 %689 }
 0x133   :  { %v234_v26 = vadd.f32 %v218_v54, %v134_v5 }
 0x135   :  { %v297_v23 = vpop.permute.xlu1 %296  ;;  %v1383_v57 = vpop.permute.xlu0 %701 }
 0x136   :  { %v318_v1 = vmul.f32 %v1216_v55, %v297_v23  ;;  %v432_v55 = vld [vmem:[%s1403_s1 + $0x8] sm:$0xff] }
 0x138   :  { %v334_v16 = vadd.f32 %v318_v1, %v234_v26 }
 0x139   :  { %v1385_v11 = vpop.permute.xlu0 %713 }
 0x13a   :  { %v385_v43 = vpop.permute.xlu1 %384 }
 0x13b   :  { %v411_v62 = vadd.f32 %v385_v43, %v331_v60 }
 0x13d   :  { %v427_v8 = vmax.f32 %v411_v62, 0.0 }
 0x13e   :  { %v393_v22 = vpop.permute.xlu1 %392  ;;  %v449_v18 = vpop.permute.xlu0 %448 }
 0x13f   :  { %v894_v13 = vpack.c.bf16 %v428_v63, %v427_v8  ;;  %v413_v46 = vadd.f32 %v393_v22, %v333_v36 }
 0x141   :  { %895 = vmatprep.subr.bf16.mxu0 %v894_v13  ;;  %908 = vmatprep.subr.bf16.mxu1 %v894_v13  ;;  %v429_v39 = vmax.f32 %v413_v46, 0.0 }
 0x142   :  { %v397_v37 = vpop.permute.xlu1 %396  ;;  %897 = vmatpush3.bf16.msra.mxu0 %v894_v13  ;;  %916 = vmatpush3.bf16.msra.mxu1 %v894_v13  ;;  %v461_v4 = vpop.permute.xlu0 %460 }
 0x143   :  { %v414_v47 = vadd.f32 %v397_v37, %v334_v16 }
 0x145   :  { %v430_v49 = vmax.f32 %v414_v47, 0.0 }
 0x147   :  { %v898_v61 = vpack.c.bf16 %v430_v49, %v429_v39 }
 0x148   :  { %v469_v24 = vpop.permute.xlu0 %468 }
 0x149   :  { %899 = vmatprep.subr.bf16.mxu0 %v898_v61  ;;  %909 = vmatprep.subr.bf16.mxu1 %v898_v61  ;;  %v453_v2 = vpop.permute.xlu1 %452 }
 0x14a   :  { %901 = vmatpush3.bf16.msra.mxu0 %v898_v61  ;;  %917 = vmatpush3.bf16.msra.mxu1 %v898_v61 }
 0x14c   :  { %v481_v61 = vpop.permute.xlu0 %480 }
 0x14d   :  { %847 = vmatmul.mubr.f32.vlgmr.msra.gmra.mrb[0].mxu0 %v432_v55  ;;  %859 = vmatmul.mubr.f32.vlgmr.msra.gmra.mrb[0].mxu1 %v440_v25  ;;  %v457_v17 = vpop.permute.xlu1 %456 }
 0x14e   :  { %849 = vmatprep.mubr.f32.mxu0 %v433_v34  ;;  %861 = vmatprep.mubr.f32.mxu1 %v441_v40 }
 0x151   :  { %850 = vmatmul.mubr.f32.gmra.mrb[2].mxu0 %v434_v12  ;;  %862 = vmatmul.mubr.f32.gmra.mrb[2].mxu1 %v442_v38 }
 0x152   :  { %852 = vmatprep.mubr.f32.mxu0 %v435_v0  ;;  %864 = vmatprep.mubr.f32.mxu1 %v443_v50  ;;  %v674_v45 = vpop.permute.xlu1 %673 }
 0x155   :  { %853 = vmatmul.mubr.f32.gmra.mrb[4].mxu0 %v436_v20  ;;  %865 = vmatmul.mubr.f32.gmra.mrb[4].mxu1 %v444_v9 }
 0x156   :  { %855 = vmatprep.mubr.f32.mxu0 %v437_v41  ;;  %867 = vmatprep.mubr.f32.mxu1 %v445_v6 }
 0x157   :  { %v465_v30 = vpop.permute.xlu1 %464 }
 0x159   :  { %856 = vmatmul.mubr.f32.gmra.mrb[6].mxu0 %v438_v44  ;;  %868 = vmatmul.mubr.f32.gmra.mrb[6].mxu1 %v446_v31 }
 0x15e   :  { %v682_v48 = vpop.permute.xlu1 %681 }
 0x162   :  { %v686_v51 = vpop.permute.xlu1 %685 }
 0x167   :  { %v473_v14 = vpop.permute.xlu1 %472 }
 0x16b   :  { %v477_v28 = vpop.permute.xlu1 %476 }
 0x170   :  { %v694_v29 = vpop.permute.xlu1 %693 }
 0x176   :  { %v698_v53 = vpop.permute.xlu1 %697 }
 0x17b   :  { %v485_v56 = vpop.permute.xlu1 %484 }
 0x17f   :  { %v489_v27 = vpop.permute.xlu1 %488 }
 0x184   :  { %v1387_v58 = vpop.permute.xlu1 %705 }
 0x188   :  { %v1389_v33 = vpop.permute.xlu1 %709 }
 0x18d   :  { %v497_v15 = vpop.permute.xlu1 %496 }
 0x192   :  { %v501_v60 = vpop.permute.xlu1 %500 }
 0x197   :  { %v718_v55 = vpop.permute.xlu1 %717 }
 0x220   :  { %v848_v59 = vpop.f32.mrb[0].mxu0  ;;  %v860_v3 = vpop.f32.mrb[0].mxu1 }
 0x221   :  { %v583_v23 = vadd.f32 %v848_v59, %v453_v2  ;;  %v577_v7 = vpop.f32.mrb[1].mxu0  ;;  %v617_v10 = vpop.f32.mrb[1].mxu1  ;;  %v623_v2 = vadd.f32 %v860_v3, %v485_v56 }
 0x222   :  { %v578_v32 = vadd.f32 %v577_v7, %v449_v18  ;;  %v618_v41 = vadd.f32 %v617_v10, %v481_v61 }
 0x223   :  { %v657_v21 = vmax.f32 %v583_v23, 0.0  ;;  %v493_v23 = vpop.permute.xlu0 %492  ;;  %v665_v7 = vmax.f32 %v623_v2, 0.0 }
 0x224   :  { %v656_v43 = vmax.f32 %v578_v32, 0.0  ;;  %v851_v35 = vpop.f32.mrb[2].mxu0  ;;  %v863_v54 = vpop.f32.mrb[2].mxu1  ;;  %v664_v18 = vmax.f32 %v618_v41, 0.0 }
 0x225   :  { %v737_v62 = vmul.f32 %v678_v52, %v657_v21  ;;  %v593_v5 = vadd.f32 %v851_v35, %v461_v4  ;;  %v587_v19 = vpop.f32.mrb[3].mxu0  ;;  %v627_v63 = vpop.f32.mrb[3].mxu1  ;;  %v633_v32 = vadd.f32 %v863_v54, %v493_v23  ;;  %v745_v3 = vmul.f32 %v1389_v33, %v665_v7 }
 0x226   :  { %v736_v1 = vmul.f32 %v674_v45, %v656_v43  ;;  %v588_v8 = vadd.f32 %v587_v19, %v457_v17  ;;  %v722_v52 = vpop.permute.xlu1 %721 }
 0x227   :  { %v659_v26 = vmax.f32 %v593_v5, 0.0  ;;  %v667_v21 = vmax.f32 %v633_v32, 0.0 }
 0x228   :  { %v752_v22 = vadd.f32 %v737_v62, %v736_v1  ;;  %v658_v13 = vmax.f32 %v588_v8, 0.0  ;;  %v854_v36 = vpop.f32.mrb[4].mxu0  ;;  %v866_v46 = vpop.f32.mrb[4].mxu1 }
 0x229   :  { %v603_v16 = vadd.f32 %v854_v36, %v469_v24  ;;  %v597_v37 = vpop.f32.mrb[5].mxu0  ;;  %v637_v47 = vpop.f32.mrb[5].mxu1  ;;  %v739_v25 = vmul.f32 %v686_v51, %v659_v26  ;;  %v628_v51 = vadd.f32 %v627_v63, %v489_v27  ;;  %v643_v43 = vadd.f32 %v866_v46, %v501_v60 }
 0x22a   :  { %v738_v39 = vmul.f32 %v682_v48, %v658_v13  ;;  %v598_v49 = vadd.f32 %v597_v37, %v465_v30  ;;  %v505_v27 = vpop.permute.xlu0 %504  ;;  %v747_v19 = vmul.f32 %v718_v55, %v667_v21 }
 0x22b   :  { %v661_v40 = vmax.f32 %v603_v16, 0.0  ;;  %v666_v10 = vmax.f32 %v628_v51, 0.0 }
 0x22c   :  { %v753_v34 = vadd.f32 %v752_v22, %v738_v39  ;;  %v660_v12 = vmax.f32 %v598_v49, 0.0  ;;  %v857_v38 = vpop.f32.mrb[6].mxu0  ;;  %v869_v0 = vpop.f32.mrb[6].mxu1 }
 0x22d   :  { %v613_v50 = vadd.f32 %v857_v38, %v477_v28  ;;  %v607_v20 = vpop.f32.mrb[7].mxu0  ;;  %v647_v9 = vpop.f32.mrb[7].mxu1  ;;  %v741_v17 = vmul.f32 %v694_v29, %v661_v40 }
 0x22e   :  { %v740_v6 = vmul.f32 %v690_v42, %v660_v12  ;;  %v754_v44 = vadd.f32 %v753_v34, %v739_v25  ;;  %v608_v31 = vadd.f32 %v607_v20, %v473_v14  ;;  %v744_v42 = vmul.f32 %v1387_v58, %v664_v18  ;;  %v509_v29 = vpop.permute.xlu1 %508  ;;  %v726_v58 = vpop.permute.xlu0 %725 }
 0x22f   :  { %v663_v48 = vmax.f32 %v613_v50, 0.0  ;;  %v638_v14 = vadd.f32 %v637_v47, %v497_v15  ;;  %v648_v54 = vadd.f32 %v647_v9, %v505_v27  ;;  %v653_v63 = vadd.f32 %v869_v0, %v509_v29 }
 0x230   :  { %v755_v45 = vadd.f32 %v754_v44, %v740_v6  ;;  %v662_v30 = vmax.f32 %v608_v31, 0.0  ;;  %v774_v34 = vstv %s1404_s3 }
 0x231   :  { %v743_v28 = vmul.f32 %v1383_v57, %v663_v48  ;;  %v668_v62 = vmax.f32 %v638_v14, 0.0  ;;  %v669_v57 = vmax.f32 %v643_v43, 0.0  ;;  %v670_v22 = vmax.f32 %v648_v54, 0.0 }
 0x232   :  { %v742_v4 = vmul.f32 %v698_v53, %v662_v30  ;;  %v756_v59 = vadd.f32 %v755_v45, %v741_v17  ;;  %v746_v53 = vmul.f32 %v1385_v11, %v666_v10  ;;  %v730_v8 = vpop.permute.xlu1 %729  ;;  %v671_v33 = vmax.f32 %v653_v63, 0.0 }
 0x233   :  { %v748_v15 = vmul.f32 %v722_v52, %v668_v62  ;;  %v749_v13 = vmul.f32 %v726_v58, %v669_v57  ;;  %v750_v46 = vmul.f32 %v730_v8, %v670_v22 }
 0x234   :  { %v757_v24 = vadd.f32 %v756_v59, %v742_v4 }
 0x236   :  { %v758_v56 = vadd.f32 %v757_v24, %v743_v28  ;;  %v734_v60 = vpop.permute.xlu1 %733 }
 0x237   :  { %v751_v11 = vmul.f32 %v734_v60, %v671_v33 }
 0x238   :  { %v759_v35 = vadd.f32 %v758_v56, %v744_v42 }
 0x23a   :  { %v760_v5 = vadd.f32 %v759_v35, %v745_v3 }
 0x23c   :  { %v761_v1 = vadd.f32 %v760_v5, %v746_v53 }
 0x23e   :  { %v762_v26 = vadd.f32 %v761_v1, %v747_v19 }
 0x240   :  { %v763_v36 = vadd.f32 %v762_v26, %v748_v15 }
 0x242   :  { %v764_v16 = vadd.f32 %v763_v36, %v749_v13 }
 0x244   :  { %v765_v37 = vadd.f32 %v764_v16, %v750_v46 }
 0x246   :  { %v766_v47 = vadd.f32 %v765_v37, %v751_v11 }
 0x248   :  { %v767_v39 = vrot.slane %v766_v47, 4 }
 0x24a   :  { %v768_v49 = vadd.f32 %v767_v39, %v766_v47 }
 0x24c   :  { %v769_v61 = vrot.slane %v768_v49, 2 }
 0x24e   :  { %v770_v55 = vadd.f32 %v769_v61, %v768_v49 }
 0x250   :  { %v771_v25 = vrot.slane %v770_v55, 1 }
 0x252   :  { %v772_v40 = vadd.f32 %v771_v25, %v770_v55 }
 0x254   :  { %v775_v12 = vadd.f32 %v774_v34, %v772_v40 }
 0x256   :  { %974 = vtanh.f32 %v775_v12 }
 0x260   :  { %v975_v38 = vpop.eup %974 }
 0x261   :  { %777 = vst [vmem:[%s1405_s4] sm:$0x1] %v975_v38 }

</bundles_post_ra>
